<compile_context>
chip_gen: v7x
topology: tpu7x:2x2x1
jax: 0.10.0
libtpu: 0.0.40
codegen_flags: <defaults>
</compile_context>

<pallas_src>
import functools

import jax
import jax.numpy as jnp
from jax import lax
from jax.experimental import pallas as pl
from jax.experimental.pallas import tpu as pltpu


def _fused_heads_kernel(x_ref, w_ref, b_ref, out_ref, *, TH, W, Cin, LC):
    """Fused 3x3 'same' conv + bias + per-head activation for one row tile.

    x_ref:   (1, H+2, W+2, Cin)   zero-padded NHWC input, resident per batch
    w_ref:   (9*Cin, LC+CC)       folded conv weights, row = (dy*3+dx)*Cin + c
    b_ref:   (1, LC+CC)           fused bias [loc_bias, clf_bias], f32
    out_ref: (1, TH*W, LC+CC)     fused activated output for this row tile
    """
    r = pl.program_id(1)
    row0 = pl.multiple_of(r * TH, TH)
    # Row tile with a 2-row halo.
    xs = x_ref[0, pl.ds(row0, TH + 2), :, :]            # (TH+2, W+2, Cin)

    # im2col: nine statically shifted (TH, W, Cin) windows, concatenated along
    # channels -> (TH*W, 9*Cin) patch -> ONE MXU matmul with K = 9*Cin.
    cols = []
    for dy in range(3):
        for dx in range(3):
            cols.append(xs[dy:dy + TH, dx:dx + W, :])
    patch = jnp.concatenate(cols, axis=-1)              # (TH, W, 9*Cin)
    patch = patch.reshape(TH * W, 9 * Cin)              # leading-dim merge

    acc = jnp.dot(patch, w_ref[...], preferred_element_type=jnp.float32)
    acc = acc + b_ref[0].astype(jnp.float32)            # f32 bias / accumulator

    # Per-head activation via channel-index mask: no lane-offset slice of the
    # accumulator (LC is not 128-aligned) and a single fused store.
    ch = lax.broadcasted_iota(jnp.int32, acc.shape, 1)
    out = jnp.where(ch < LC, jnp.maximum(acc, 0.0), jax.nn.sigmoid(acc))
    out_ref[0] = out.astype(out_ref.dtype)


def _pick_row_tile(H, W):
    """Largest row tile giving >=2 grid steps with (8,128)-legal output blocks."""
    for th in range(max(1, H // 2), 0, -1):
        if H % th == 0 and (th * W) % 8 == 0:
            return th
    return H


def fused_conv_heads(x_pad_nhwc, w2d, b2d, loc_channels, clf_channels,
                     row_tile=None):
    """One pallas_call computing both detector heads. Grid = (B, H // TH)."""
    B, Hp, Wp, Cin = x_pad_nhwc.shape
    H, W = Hp - 2, Wp - 2
    Ctot = loc_channels + clf_channels
    TH = row_tile if row_tile is not None else _pick_row_tile(H, W)
    assert H % TH == 0, (H, TH)
    nH = H // TH

    kern = functools.partial(_fused_heads_kernel, TH=TH, W=W, Cin=Cin,
                             LC=loc_channels)
    return pl.pallas_call(
        kern,
        out_shape=jax.ShapeDtypeStruct((B, H * W, Ctot), jnp.float32),
        grid_spec=pltpu.PrefetchScalarGridSpec(
            num_scalar_prefetch=0,
            grid=(B, nH),
            in_specs=[
                # Padded image resident per batch element (constant along r ->
                # DMA'd once per b); halo row-tile is sliced in the kernel.
                pl.BlockSpec((1, Hp, Wp, Cin), lambda b, r: (b, 0, 0, 0)),
                # Folded weights / bias: fetched once, VMEM-resident.
                pl.BlockSpec((9 * Cin, Ctot), lambda b, r: (0, 0)),
                pl.BlockSpec((1, Ctot), lambda b, r: (0, 0)),
            ],
            out_specs=pl.BlockSpec((1, TH * W, Ctot), lambda b, r: (b, r, 0)),
        ),
        compiler_params=pltpu.CompilerParams(
            # Both axes independent: row tiles + batch split across the two
            # TensorCores on v7x; neutral on v5e/v6e.
            dimension_semantics=("parallel", "parallel")),
    )(x_pad_nhwc, w2d, b2d)


def init_params(key, in_channels, num_classes, num_anchors):
    """Deterministic synthetic parameters (PyTorch conv weight = OIHW)."""
    k1, k2, k3, k4 = jax.random.split(key, 4)
    loc_out = 4 * num_anchors
    clf_out = num_classes * num_anchors
    loc_w_oihw = 0.1 * jax.random.normal(k1, (loc_out, in_channels, 3, 3), jnp.float32)
    clf_w_oihw = 0.1 * jax.random.normal(k2, (clf_out, in_channels, 3, 3), jnp.float32)
    loc_b = 0.1 * jax.random.normal(k3, (loc_out,), jnp.float32)
    clf_b = 0.1 * jax.random.normal(k4, (clf_out,), jnp.float32)

    # OIHW -> HWIO, fuse both heads along Cout, fold taps:
    # (3,3,Cin,Ctot) -> (9*Cin, Ctot) with row index (dy*3+dx)*Cin + c.
    loc_w_hwio = jnp.transpose(loc_w_oihw, (2, 3, 1, 0))
    clf_w_hwio = jnp.transpose(clf_w_oihw, (2, 3, 1, 0))
    w_fused = jnp.concatenate([loc_w_hwio, clf_w_hwio], axis=-1)
    w2d = w_fused.reshape(9 * in_channels, loc_out + clf_out)
    b2d = jnp.concatenate([loc_b, clf_b]).reshape(1, loc_out + clf_out)

    return {
        "w2d": w2d,
        "b2d": b2d,
        # Kept only for the pure-JAX reference check:
        "loc_w_oihw": loc_w_oihw,
        "clf_w_oihw": clf_w_oihw,
        "loc_b": loc_b,
        "clf_b": clf_b,
    }


def base_loc_clf_predictor(x_nchw, params, num_classes, num_anchors,
                           compute_dtype=jnp.float32):
    """Forward pass matching BaseLocClfPredictor.forward (body=None)."""
    B = x_nchw.shape[0]
    LC = 4 * num_anchors
    CC = num_classes * num_anchors
    # NCHW (PyTorch) -> NHWC + 1px halo pad (see TODO about HLO fusion above).
    x = jnp.transpose(x_nchw, (0, 2, 3, 1))
    x = jnp.pad(x, ((0, 0), (1, 1), (1, 1), (0, 0)))
    # bf16 operands halve input+weight HBM traffic and double MXU rate on
    # v6e/v7x; accumulation, bias and activations stay f32 inside the kernel.
    x = x.astype(compute_dtype)
    w = params["w2d"].astype(compute_dtype)
    fused = fused_conv_heads(x, w, params["b2d"], LC, CC)   # (B, H*W, LC+CC) f32
    # Contiguous channel split + plain reshape (NHWC already matches
    # permute(0,2,3,1); .view(B, -1, k) is a reshape).
    loc = fused[:, :, :LC].reshape(B, -1, 4)
    clf = fused[:, :, LC:].reshape(B, -1, num_classes)
    return loc, clf


def _reference(x_nchw, params, num_classes):
    """Pure-JAX (lax.conv) reference of the PyTorch forward for validation."""
    def conv(x, w_oihw, b):
        y = lax.conv_general_dilated(
            x, w_oihw, window_strides=(1, 1), padding="SAME",
            dimension_numbers=("NCHW", "OIHW", "NCHW"))
        return y + b[None, :, None, None]
    B = x_nchw.shape[0]
    loc = jnp.maximum(conv(x_nchw, params["loc_w_oihw"], params["loc_b"]), 0.0)
    clf = jax.nn.sigmoid(conv(x_nchw, params["clf_w_oihw"], params["clf_b"]))
    loc = jnp.transpose(loc, (0, 2, 3, 1)).reshape(B, -1, 4)
    clf = jnp.transpose(clf, (0, 2, 3, 1)).reshape(B, -1, num_classes)
    return loc, clf


if __name__ == "__main__":
    B, Cin, H, W = 2, 4, 16, 16
    num_classes, num_anchors = 3, 2

    key = jax.random.PRNGKey(0)
    kx, kp = jax.random.split(key)
    x = jax.random.normal(kx, (B, Cin, H, W), jnp.float32)  # NCHW, like PyTorch
    params = init_params(kp, Cin, num_classes, num_anchors)

    loc_ref, clf_ref = _reference(x, params, num_classes)

    # f32 path: exact-ish match to the lax.conv reference.
    loc, clf = base_loc_clf_predictor(x, params, num_classes, num_anchors,
                                      compute_dtype=jnp.float32)
    loc, clf = jax.block_until_ready((loc, clf))
    assert loc.shape == (B, H * W * num_anchors, 4), loc.shape
    assert clf.shape == (B, H * W * num_anchors, num_classes), clf.shape
    assert jnp.allclose(loc, loc_ref, atol=1e-5, rtol=1e-5)
    assert jnp.allclose(clf, clf_ref, atol=1e-5, rtol=1e-5)

    # bf16 operand path (f32 accumulate/bias/activations): looser tolerance.
    loc16, clf16 = base_loc_clf_predictor(x, params, num_classes, num_anchors,
                                          compute_dtype=jnp.bfloat16)
    loc16, clf16 = jax.block_until_ready((loc16, clf16))
    assert jnp.allclose(loc16, loc_ref, atol=3e-2, rtol=3e-2)
    assert jnp.allclose(clf16, clf_ref, atol=3e-2, rtol=3e-2)

    print("KERNEL_OK")
</pallas_src>

<mosaic_0001>
module attributes {stable_mosaic.version = 11 : i64} {
  func.func @_fused_heads_kernel(%arg0: i32, %arg1: i32, %arg2: memref<1x18x18x4xf32, #tpu.memory_space<vmem>>, %arg3: memref<36x14xf32, #tpu.memory_space<vmem>>, %arg4: memref<1x14xf32, #tpu.memory_space<vmem>>, %arg5: memref<1x128x14xf32, #tpu.memory_space<vmem>>) attributes {dimension_semantics = [#tpu.dimension_semantics<parallel>, #tpu.dimension_semantics<parallel>], iteration_bounds = array<i64: 2, 2>, scalar_prefetch = 0 : i64, scratch_operands = 0 : i64, tpu.core_type = #tpu.core_type<tc>, window_params = [{transform_indices = @transform_0, window_bounds = array<i64: 1, 18, 18, 4>}, {pipeline_mode = #tpu.pipeline_mode<synchronous>, transform_indices = @transform_1, window_bounds = array<i64: 36, 14>}, {pipeline_mode = #tpu.pipeline_mode<synchronous>, transform_indices = @transform_2, window_bounds = array<i64: 1, 14>}, {transform_indices = @transform_3, window_bounds = array<i64: 1, 128, 14>}]} {
    %c8_i32 = arith.constant 8 : i32
    %0 = arith.muli %arg1, %c8_i32 : i32
    %1 = tpu.assume_multiple %0, 8 : i32
    %c0 = arith.constant 0 : index
    %2 = arith.index_cast %1 : i32 to index
    %c0_0 = arith.constant 0 : index
    %c0_1 = arith.constant 0 : index
    %3 = vector.load %arg2[%c0, %2, %c0_0, %c0_1] : memref<1x18x18x4xf32, #tpu.memory_space<vmem>>, vector<1x10x18x4xf32>
    %4 = vector.shape_cast %3 : vector<1x10x18x4xf32> to vector<10x18x4xf32>
    %5 = vector.extract_strided_slice %4 {offsets = [0, 0, 0], sizes = [8, 16, 4], strides = [1, 1, 1]} : vector<10x18x4xf32> to vector<8x16x4xf32>
    %6 = vector.extract_strided_slice %4 {offsets = [0, 1, 0], sizes = [8, 16, 4], strides = [1, 1, 1]} : vector<10x18x4xf32> to vector<8x16x4xf32>
    %7 = vector.extract_strided_slice %4 {offsets = [0, 2, 0], sizes = [8, 16, 4], strides = [1, 1, 1]} : vector<10x18x4xf32> to vector<8x16x4xf32>
    %8 = vector.extract_strided_slice %4 {offsets = [1, 0, 0], sizes = [8, 16, 4], strides = [1, 1, 1]} : vector<10x18x4xf32> to vector<8x16x4xf32>
    %9 = vector.extract_strided_slice %4 {offsets = [1, 1, 0], sizes = [8, 16, 4], strides = [1, 1, 1]} : vector<10x18x4xf32> to vector<8x16x4xf32>
    %10 = vector.extract_strided_slice %4 {offsets = [1, 2, 0], sizes = [8, 16, 4], strides = [1, 1, 1]} : vector<10x18x4xf32> to vector<8x16x4xf32>
    %11 = vector.extract_strided_slice %4 {offsets = [2, 0, 0], sizes = [8, 16, 4], strides = [1, 1, 1]} : vector<10x18x4xf32> to vector<8x16x4xf32>
    %12 = vector.extract_strided_slice %4 {offsets = [2, 1, 0], sizes = [8, 16, 4], strides = [1, 1, 1]} : vector<10x18x4xf32> to vector<8x16x4xf32>
    %13 = vector.extract_strided_slice %4 {offsets = [2, 2, 0], sizes = [8, 16, 4], strides = [1, 1, 1]} : vector<10x18x4xf32> to vector<8x16x4xf32>
    %14 = tpu.concatenate %5, %6, %7, %8, %9, %10, %11, %12, %13 in 2 : vector<8x16x4xf32>, vector<8x16x4xf32>, vector<8x16x4xf32>, vector<8x16x4xf32>, vector<8x16x4xf32>, vector<8x16x4xf32>, vector<8x16x4xf32>, vector<8x16x4xf32>, vector<8x16x4xf32> -> vector<8x16x36xf32>
    %15 = vector.shape_cast %14 : vector<8x16x36xf32> to vector<128x36xf32>
    %c0_2 = arith.constant 0 : index
    %c0_3 = arith.constant 0 : index
    %16 = vector.load %arg3[%c0_2, %c0_3] : memref<36x14xf32, #tpu.memory_space<vmem>>, vector<36x14xf32>
    %cst = arith.constant dense<0.000000e+00> : vector<128x14xf32>
    %17 = tpu.matmul %15, %16, %cst {dimension_numbers = #tpu.dot_dimension_numbers<[1], [0], [0], [1], [0, 0, 1, 1], [], []>} : vector<128x36xf32>, vector<36x14xf32>, vector<128x14xf32> -> vector<128x14xf32>
    %c0_4 = arith.constant 0 : index
    %c0_5 = arith.constant 0 : index
    %18 = vector.load %arg4[%c0_4, %c0_5] : memref<1x14xf32, #tpu.memory_space<vmem>>, vector<1x14xf32>
    %19 = vector.shape_cast %18 : vector<1x14xf32> to vector<14xf32>
    %20 = vector.shape_cast %19 : vector<14xf32> to vector<1x14xf32>
    %21 = vector.broadcast %20 : vector<1x14xf32> to vector<128x14xf32>
    %22 = arith.addf %17, %21 : vector<128x14xf32>
    %23 = tpu.iota {dimensions = array<i32: 1>} : vector<128x14xi32>
    %c8_i32_6 = arith.constant 8 : i32
    %24 = vector.broadcast %c8_i32_6 : i32 to vector<128x14xi32>
    %25 = arith.cmpi slt, %23, %24 : vector<128x14xi32>
    %cst_7 = arith.constant 0.000000e+00 : f32
    %26 = vector.broadcast %cst_7 : f32 to vector<128x14xf32>
    %27 = arith.maximumf %22, %26 : vector<128x14xf32>
    %28 = arith.negf %22 : vector<128x14xf32>
    %29 = math.exp %28 : vector<128x14xf32>
    %cst_8 = arith.constant 1.000000e+00 : f32
    %30 = vector.broadcast %cst_8 : f32 to vector<128x14xf32>
    %31 = arith.addf %30, %29 : vector<128x14xf32>
    %32 = arith.divf %30, %31 : vector<128x14xf32>
    %33 = arith.select %25, %27, %32 : vector<128x14xi1>, vector<128x14xf32>
    %c0_9 = arith.constant 0 : index
    %c0_10 = arith.constant 0 : index
    %c0_11 = arith.constant 0 : index
    %34 = vector.load %arg5[%c0_9, %c0_10, %c0_11] : memref<1x128x14xf32, #tpu.memory_space<vmem>>, vector<1x128x14xf32>
    %35 = vector.shape_cast %34 : vector<1x128x14xf32> to vector<128x14xf32>
    %36 = vector.shape_cast %33 : vector<128x14xf32> to vector<1x128x14xf32>
    tpu.vector_store %arg5[%c0_9, %c0_10, %c0_11], %36 {strides = array<i32>} : memref<1x128x14xf32, #tpu.memory_space<vmem>>, vector<1x128x14xf32>,
    return
  }
  func.func @transform_0(%arg0: i32, %arg1: i32) -> (i32, i32, i32, i32) {
    %c0_i32 = arith.constant 0 : i32
    %c0_i32_0 = arith.constant 0 : i32
    %c0_i32_1 = arith.constant 0 : i32
    %c0_i32_2 = arith.constant 0 : i32
    return %arg0, %c0_i32, %c0_i32_0, %c0_i32_1 : i32, i32, i32, i32
  }
  func.func @transform_1(%arg0: i32, %arg1: i32) -> (i32, i32) {
    %c0_i32 = arith.constant 0 : i32
    %c0_i32_0 = arith.constant 0 : i32
    %c0_i32_1 = arith.constant 0 : i32
    return %c0_i32, %c0_i32_0 : i32, i32
  }
  func.func @transform_2(%arg0: i32, %arg1: i32) -> (i32, i32) {
    %c0_i32 = arith.constant 0 : i32
    %c0_i32_0 = arith.constant 0 : i32
    %c0_i32_1 = arith.constant 0 : i32
    return %c0_i32, %c0_i32_0 : i32, i32
  }
  func.func @transform_3(%arg0: i32, %arg1: i32) -> (i32, i32, i32) {
    %c0_i32 = arith.constant 0 : i32
    %c0_i32_0 = arith.constant 0 : i32
    return %arg0, %arg1, %c0_i32 : i32, i32, i32
  }
}

</mosaic_0001>

<bundles_post_ra>
// kernel: tpu_custom_call.1
= control target key start
LH: loop header
LB: loop body
LE: loop exit
PB: predicated region body
PF: predicated region fallthrough
CT: control target
= control target key end

     0   :  { %s1620_s12 = smov 0   ;;  %s1622_s13 = smov 0   ;;  %s2412_s0 = inlined_call_operand.vmem [shape: f32[2,18,18,4], index: 0, kind: input, shape index: {}]   ;;  %s2413_s1 = inlined_call_operand.vmem [shape: f32[36,14], index: 1, kind: input, shape index: {}]   ;;  %s2414_s2 = inlined_call_operand.vmem [shape: f32[1,14], index: 2, kind: input, shape index: {}]   ;;  %s2415_s3 = inlined_call_operand.vmem [shape: f32[2,256,14], index: 3, kind: output, shape index: {}]  }
   0x1   :  { %s1624_s14 = smov 0   ;;  %s1626_s15 = smov 0  }
   0x2   :  { %s1628_s16 = smov 0  }
   0x3 LB: > { %s22_s17 = sadd.s32 1, %s1582_s14  ;;  %s25_s18 = sadd.s32 1, %s1586_s15  ;;  %s1590_s16 = sphi %s1628_s16, %s13_s16   ;;  %s1586_s15 = sphi %s1626_s15, %s2446_s15   ;;  %s1582_s14 = sphi %s1624_s14, %s2445_s14   ;;  %s1578_s13 = sphi %s1622_s13, %s2444_s13   ;;  %s1574_s12 = sphi %s1620_s12, %s2443_s12  }
   0x4   : > { %p23_p0 = scmp.ge.s32.totalorder %s22_s17, 2  ;;  %p1327_p1 = scmp.ge.s32.totalorder %s1590_s16, 1 }
   0x5   : > { %p151_p2 = scmp.lt.s32.totalorder %s1590_s16, 5 }
   0x6   : > { %s2448_s17 = smov (%p23_p0, %s22_s17), 0  ;;  %s2450_s18 = smov (!%p23_p0, %s25_s18), %s1586_s15 }
   0x7   : > { %p152_p3 = pnand %p1327_p1, %p151_p2  ;;  %p27_p4 = scmp.ge.s32.totalorder %s2450_s18, 2 }
   0x9   : > { %s2452_s18 = smov (%p27_p4, %s2450_s18), 0  ;;  %155 = sbr.rel (%p152_p3) target bundleno = 641 (0x281), region = 32 }
  0x10   : > { %p179_p5 = scmp.lt.s32.totalorder %s1578_s13, 1  ;;  %s1333_s19 = smul.u32 192, %s1574_s12  ;;  %vm251_vm0 = vcmask 1046528   ;;  %vm340_vm1 = vcmask 1045504   ;;  %vm940_vm2 = vcmask 1043456   ;;  %vm743_vm3 = vcmask 31744  }
  0x11   : > { %s1592_s25 = smov 4   ;;  %s1593_s26 = smov 8   ;;  %vm760_vm4 = vcmask 64512   ;;  %vm777_vm5 = vcmask 97280   ;;  %vm794_vm6 = vcmask 130048   ;;  %vm811_vm7 = vcmask 162816  }
  0x12   : > { %s2454_s13 = smov (!%p179_p5, %s1578_s13), 1  ;;  %s1594_s27 = smov 12   ;;  %vm828_vm8 = vcmask 195584   ;;  %vm845_vm9 = vcmask 228352   ;;  %vm862_vm10 = vcmask 261120   ;;  %vm891_vm11 = vcmask 293888  }
  0x13   : > { %s1439_s20 = smul.u32 432, %s2454_s13  ;;  %s1595_s28 = smov 16   ;;  %vm1220_vm13 = vcmask 113664  }
  0x14   : > { %s1596_s29 = smov 20   ;;  %s1597_s30 = smov 24  }
  0x15   : > { %s183_s23 = scalar_lea.vmem %s2412_s0, %s1439_s20  ;;  %s1598_s4 = smov 28  }
  0x16   : > { %s1659_s24 = scalar_lea.vmem %s183_s23, %s1333_s19  ;;  %s1599_s20 = smov 32  }
  0x17   : > { %v1662_v0 = vld [vmem:[%s1659_s24 + $0x8] sm:$0xff]  ;;  %v199_v1 = vld [vmem:[%s1659_s24 + $0x10] sm:$0x3]  ;;  %v1666_v2 = vld [vmem:[%s1659_s24] sm:$0xff] }
  0x18   : > { %v253_v3 = vrot.slane %v1662_v0, 1  ;;  %v255_v4 = vrot.slane %v199_v1, 1  ;;  %v252_v5 = vrot.slane %v1666_v2, 1  ;;  %v1671_v6 = vld [vmem:[%s1659_s24 + $0x68] sm:$0xff]  ;;  %v211_v7 = vld [vmem:[%s1659_s24 + $0x70] sm:$0x3] }
  0x19   : > { %v273_v8 = vrot.slane %v1671_v6, 1  ;;  %v275_v9 = vrot.slane %v211_v7, 1  ;;  %v1676_v10 = vld [vmem:[%s1659_s24 + $0x60] sm:$0xff]  ;;  %v362_v14 = vrot.slane %v1671_v6, 2  ;;  %v341_v15 = vrot.slane %v1666_v2, 2  ;;  %v1712_v26 = vld [vmem:[%s1659_s24 + $0x78] sm:$0xff] }
  0x1a   : > { %v256_v11 = vsel %vm251_vm0, %v253_v3, %v255_v4  ;;  %v254_v12 = vsel %vm251_vm0, %v252_v5, %v253_v3  ;;  %v272_v13 = vrot.slane %v1676_v10, 1  ;;  %v361_v18 = vrot.slane %v1676_v10, 2  ;;  %v1715_v27 = vld [vmem:[%s1659_s24 + $0x18] sm:$0xff]  ;;  %v1718_v28 = vld [vmem:[%s1659_s24 + $0x80] sm:$0xff]  ;;  %v214_v36 = vld [vmem:[%s1659_s24 + $0x88] sm:$0x3] }
  0x1b   : > { %294 = vrot.lane.b32.xlu1 %v256_v11, %s1592_s25  ;;  %292 = vrot.lane.b32.xlu0 %v254_v12, %s1592_s25  ;;  %v1686_v16 = vsel %vm251_vm0, %v273_v8, %v275_v9  ;;  %v342_v19 = vrot.slane %v1662_v0, 2  ;;  %v364_v22 = vrot.slane %v211_v7, 2  ;;  %v344_v23 = vrot.slane %v199_v1, 2  ;;  %v1721_v29 = vld [vmem:[%s1659_s24 + $0x20] sm:$0xff]  ;;  %v202_v37 = vld [vmem:[%s1659_s24 + $0x28] sm:$0x3] }
  0x1c   : > { %v1689_v17 = vsel %vm251_vm0, %v272_v13, %v273_v8  ;;  %v1698_v20 = vsel %vm340_vm1, %v361_v18, %v362_v14  ;;  %v277_v30 = vrot.slane %v1712_v26, 1  ;;  %v278_v31 = vrot.slane %v1718_v28, 1  ;;  %v1779_v52 = vld [vmem:[%s1659_s24 + $0x90] sm:$0xff]  ;;  %v1792_v54 = vld [vmem:[%s1659_s24 + $0x98] sm:$0xff]  ;;  %v217_v62 = vld [vmem:[%s1659_s24 + $0xa0] sm:$0x3] }
  0x1d   : > { %v343_v21 = vsel %vm340_vm1, %v341_v15, %v342_v19  ;;  %v1705_v24 = vsel %vm340_vm1, %v362_v14, %v364_v22  ;;  %v345_v25 = vsel %vm340_vm1, %v342_v19, %v344_v23  ;;  %v257_v32 = vrot.slane %v1715_v27, 1  ;;  %v1782_v53 = vld [vmem:[%s1659_s24 + $0x30] sm:$0xff]  ;;  %v1795_v55 = vld [vmem:[%s1659_s24 + $0x38] sm:$0xff]  ;;  %v205_v63 = vld [vmem:[%s1659_s24 + $0x40] sm:$0x3] }
  0x1e   : > { %v258_v33 = vrot.slane %v1721_v29, 1  ;;  %v1736_v34 = vsel %vm251_vm0, %v277_v30, %v278_v31  ;;  %v280_v38 = vrot.slane %v214_v36, 1  ;;  %v260_v39 = vrot.slane %v202_v37, 1  ;;  %2429 = vst [vmem:[#allocation6_spill] sm:$0xff] %v1795_v55  ;;  %v879_v8 = vld [vmem:[%s2413_s1] sm:$0xff]  ;;  %v880_v9 = vld [vmem:[%s2413_s1 + $0x8] sm:$0xff] }
  0x1f   : > { %310 = vrot.lane.b32.xlu1 %v1686_v16, %s1592_s25  ;;  %308 = vrot.lane.b32.xlu0 %v1689_v17, %s1592_s25  ;;  %2425 = vst [vmem:[#allocation2_spill] sm:$0xff] %v1736_v34  ;;  %v366_v40 = vrot.slane %v1712_v26, 2  ;;  %v367_v41 = vrot.slane %v1718_v28, 2  ;;  %v346_v44 = vrot.slane %v1715_v27, 2  ;;  %v347_v45 = vrot.slane %v1721_v29, 2  ;;  %v881_v15 = vld [vmem:[%s2413_s1 + $0x10] sm:$0xff] }
  0x20   : > { %v259_v35 = vsel %vm251_vm0, %v257_v32, %v258_v33  ;;  %v1750_v42 = vsel %vm251_vm0, %v278_v31, %v280_v38  ;;  %v261_v43 = vsel %vm251_vm0, %v258_v33, %v260_v39  ;;  %v369_v48 = vrot.slane %v214_v36, 2  ;;  %v882_v18 = vld [vmem:[%s2413_s1 + $0x18] sm:$0xff]  ;;  %v883_v23 = vld [vmem:[%s2413_s1 + $0x20] sm:$0xf]  ;;  %v1865_v33 = vld [vmem:[%s1659_s24 + $0xa8] sm:$0xff] }
  0x21   : > { %2426 = vst [vmem:[#allocation3_spill] sm:$0xff] %v1750_v42  ;;  %v1759_v46 = vsel %vm340_vm1, %v366_v40, %v367_v41  ;;  %v348_v47 = vsel %vm340_vm1, %v346_v44, %v347_v45  ;;  %v349_v49 = vrot.slane %v202_v37, 2  ;;  %v282_v56 = vrot.slane %v1779_v52, 1  ;;  %2430 = vst [vmem:[#allocation7_spill] sm:$0xff] %v1865_v33  ;;  %v1892_v44 = vld [vmem:[%s1659_s24 + $0x50] sm:$0xff] }
  0x22   : > { %2427 = vst [vmem:[#allocation4_spill] sm:$0xff] %v1759_v46  ;;  %v1772_v50 = vsel %vm340_vm1, %v367_v41, %v369_v48  ;;  %v283_v57 = vrot.slane %v1792_v54, 1  ;;  %v262_v58 = vrot.slane %v1782_v53, 1  ;;  %v263_v59 = vrot.slane %v1795_v55, 1  ;;  %2433 = vst [vmem:[#allocation10_spill] sm:$0xff] %v1892_v44 }
  0x23   : > { %397 = vrot.lane.b32.xlu1 %v1698_v20, %s1593_s26  ;;  %381 = vrot.lane.b32.xlu0 %v343_v21, %s1593_s26  ;;  %2428 = vst [vmem:[#allocation5_spill] sm:$0xff] %v1772_v50  ;;  %v350_v51 = vsel %vm340_vm1, %v347_v45, %v349_v49  ;;  %v285_v1 = vrot.slane %v217_v62, 1  ;;  %v265_v3 = vrot.slane %v205_v63, 1  ;;  %v371_v4 = vrot.slane %v1779_v52, 2 }
  0x24   : > { %v284_v60 = vsel %vm251_vm0, %v282_v56, %v283_v57  ;;  %v264_v61 = vsel %vm251_vm0, %v262_v58, %v263_v59  ;;  %v372_v5 = vrot.slane %v1792_v54, 2  ;;  %v351_v7 = vrot.slane %v1782_v53, 2 }
  0x25   : > { %v286_v11 = vsel %vm251_vm0, %v283_v57, %v285_v1  ;;  %v266_v12 = vsel %vm251_vm0, %v263_v59, %v265_v3  ;;  %v352_v13 = vrot.slane %v1795_v55, 2  ;;  %v1425_v14 = vpack.c.bf16 %v880_v9, %v879_v8 }
  0x26   : > { %v373_v19 = vsel %vm340_vm1, %v371_v4, %v372_v5  ;;  %v1429_v22 = vpack.c.bf16 %v882_v18, %v881_v15  ;;  %v354_v30 = vrot.slane %v205_v63, 2  ;;  %v287_v45 = vrot.slane %v1865_v33, 1 }
  0x27   : > { %399 = vrot.lane.b32.xlu1 %v1705_v24, %s1593_s26  ;;  %383 = vrot.lane.b32.xlu0 %v345_v25, %s1593_s26  ;;  %v353_v21 = vsel %vm340_vm1, %v351_v7, %v352_v13  ;;  %v374_v25 = vrot.slane %v217_v62, 2  ;;  %v268_v49 = vrot.slane %v1892_v44, 1  ;;  %v208_v62 = vld [vmem:[%s1659_s24 + $0x58] sm:$0x3] }
  0x28   : > { %1426 = vmatprep.subr.bf16.mxu0 %v1425_v14  ;;  %1433 = vmatprep.subr.bf16.mxu1 %v1425_v14  ;;  %v355_v32 = vsel %vm340_vm1, %v352_v13, %v354_v30  ;;  %v270_v4 = vrot.slane %v208_v62, 1 }
  0x29   : > { %1428 = vmatpush3.bf16.msra.mxu0 %v1425_v14  ;;  %1436 = vmatpush3.bf16.msra.mxu1 %v1425_v14  ;;  %v375_v31 = vsel %vm340_vm1, %v372_v5, %v374_v25  ;;  %v357_v14 = vrot.slane %v1892_v44, 2 }
  0x2a   : > { %1430 = vmatprep.subr.bf16.mxu0 %v1429_v22  ;;  %1434 = vmatprep.subr.bf16.mxu1 %v1429_v22  ;;  %v271_v9 = vsel %vm251_vm0, %v268_v49, %v270_v4 }
  0x2b   : > { %447 = vrot.lane.b32.xlu1 %v1712_v26, %s1594_s27  ;;  %431 = vrot.lane.b32.xlu0 %v1715_v27, %s1594_s27 }
  0x2d   : > { %1432 = vmatpush3.bf16.msra.mxu0 %v1429_v22  ;;  %1437 = vmatpush3.bf16.msra.mxu1 %v1429_v22 }
  0x2e   : > { %1399 = vmatprep.subr.msk.mxu0 %vm940_vm2, %v883_v23  ;;  %1435 = vmatprep.subr.msk.mxu1 %vm940_vm2, %v883_v23 }
  0x2f   : > { %449 = vrot.lane.b32.xlu1 %v1718_v28, %s1594_s27  ;;  %433 = vrot.lane.b32.xlu0 %v1721_v29, %s1594_s27 }
  0x31   : > { %1400 = vmatpush3.msk.msra.mxu0 %vm940_vm2, %v883_v23  ;;  %1438 = vmatpush3.msk.msra.mxu1 %vm940_vm2, %v883_v23 }
  0x33   : > { %501 = vrot.lane.b32.xlu1 %v1736_v34, %s1595_s28  ;;  %485 = vrot.lane.b32.xlu0 %v259_v35, %s1595_s28 }
  0x37   : > { %312 = vrot.lane.b32.xlu1 %v1736_v34, %s1592_s25  ;;  %296 = vrot.lane.b32.xlu0 %v259_v35, %s1592_s25  ;;  %v1868_v35 = vld [vmem:[%s1659_s24 + $0x48] sm:$0xff] }
  0x38   : > { %2431 = vst [vmem:[#allocation8_spill] sm:$0xff] %v1868_v35  ;;  %v267_v48 = vrot.slane %v1868_v35, 1  ;;  %v356_v13 = vrot.slane %v1868_v35, 2 }
  0x3a   : > { %v269_v58 = vsel %vm251_vm0, %v267_v48, %v268_v49 }
  0x3b   : > { %503 = vrot.lane.b32.xlu1 %v1750_v42, %s1595_s28  ;;  %487 = vrot.lane.b32.xlu0 %v261_v43, %s1595_s28 }
  0x3f   : > { %554 = vrot.lane.b32.xlu1 %v1759_v46, %s1596_s29  ;;  %538 = vrot.lane.b32.xlu0 %v348_v47, %s1596_s29 }
  0x43   : > { %314 = vrot.lane.b32.xlu1 %v1750_v42, %s1592_s25  ;;  %298 = vrot.lane.b32.xlu0 %v261_v43, %s1592_s25  ;;  %v1889_v43 = vld [vmem:[%s1659_s24 + $0xb0] sm:$0xff] }
  0x44   : > { %2432 = vst [vmem:[#allocation9_spill] sm:$0xff] %v1889_v43 }
  0x47   : > { %401 = vrot.lane.b32.xlu1 %v1759_v46, %s1593_s26  ;;  %385 = vrot.lane.b32.xlu0 %v348_v47, %s1593_s26  ;;  %v288_v47 = vrot.slane %v1889_v43, 1 }
  0x49   : > { %v289_v57 = vsel %vm251_vm0, %v287_v45, %v288_v47 }
  0x4b   : > { %556 = vrot.lane.b32.xlu1 %v1772_v50, %s1596_s29  ;;  %540 = vrot.lane.b32.xlu0 %v350_v51, %s1596_s29 }
  0x4f   : > { %604 = vrot.lane.b32.xlu1 %v1779_v52, %s1597_s30  ;;  %588 = vrot.lane.b32.xlu0 %v1782_v53, %s1597_s30 }
  0x53   : > { %403 = vrot.lane.b32.xlu1 %v1772_v50, %s1593_s26  ;;  %387 = vrot.lane.b32.xlu0 %v350_v51, %s1593_s26 }
  0x57   : > { %451 = vrot.lane.b32.xlu1 %v1779_v52, %s1594_s27  ;;  %435 = vrot.lane.b32.xlu0 %v1782_v53, %s1594_s27 }
  0x5b   : > { %606 = vrot.lane.b32.xlu1 %v1792_v54, %s1597_s30  ;;  %590 = vrot.lane.b32.xlu0 %v1795_v55, %s1597_s30 }
  0x5f   : > { %658 = vrot.lane.b32.xlu1 %v284_v60, %s1598_s4  ;;  %642 = vrot.lane.b32.xlu0 %v264_v61, %s1598_s4 }
  0x63   : > { %453 = vrot.lane.b32.xlu1 %v1792_v54, %s1594_s27  ;;  %437 = vrot.lane.b32.xlu0 %v1795_v55, %s1594_s27 }
  0x67   : > { %505 = vrot.lane.b32.xlu1 %v284_v60, %s1595_s28  ;;  %489 = vrot.lane.b32.xlu0 %v264_v61, %s1595_s28 }
  0x6b   : > { %660 = vrot.lane.b32.xlu1 %v286_v11, %s1598_s4  ;;  %644 = vrot.lane.b32.xlu0 %v266_v12, %s1598_s4 }
  0x6f   : > { %711 = vrot.lane.b32.xlu1 %v373_v19, %s1599_s20  ;;  %695 = vrot.lane.b32.xlu0 %v353_v21, %s1599_s20 }
  0x73   : > { %316 = vrot.lane.b32.xlu1 %v284_v60, %s1592_s25  ;;  %300 = vrot.lane.b32.xlu0 %v264_v61, %s1592_s25  ;;  %v220_v61 = vld [vmem:[%s1659_s24 + $0xb8] sm:$0x3] }
  0x74   : > { %v290_v3 = vrot.slane %v220_v61, 1  ;;  %v379_v45 = vrot.slane %v220_v61, 2 }
  0x76   : > { %v291_v8 = vsel %vm251_vm0, %v288_v47, %v290_v3  ;;  %v359_v47 = vrot.slane %v208_v62, 2 }
  0x77   : > { %507 = vrot.lane.b32.xlu1 %v286_v11, %s1595_s28  ;;  %491 = vrot.lane.b32.xlu0 %v266_v12, %s1595_s28 }
  0x7b   : > { %558 = vrot.lane.b32.xlu1 %v373_v19, %s1596_s29  ;;  %542 = vrot.lane.b32.xlu0 %v353_v21, %s1596_s29 }
  0x7f   : > { %713 = vrot.lane.b32.xlu1 %v375_v31, %s1599_s20  ;;  %697 = vrot.lane.b32.xlu0 %v355_v32, %s1599_s20 }
  0x83   : > { %318 = vrot.lane.b32.xlu1 %v286_v11, %s1592_s25  ;;  %302 = vrot.lane.b32.xlu0 %v266_v12, %s1592_s25  ;;  %v376_v11 = vrot.slane %v1865_v33, 2  ;;  %v377_v12 = vrot.slane %v1889_v43, 2 }
  0x87   : > { %405 = vrot.lane.b32.xlu1 %v373_v19, %s1593_s26  ;;  %389 = vrot.lane.b32.xlu0 %v353_v21, %s1593_s26  ;;  %v378_v19 = vsel %vm340_vm1, %v376_v11, %v377_v12  ;;  %v358_v21 = vsel %vm340_vm1, %v356_v13, %v357_v14 }
  0x8b   : > { %560 = vrot.lane.b32.xlu1 %v375_v31, %s1596_s29  ;;  %544 = vrot.lane.b32.xlu0 %v355_v32, %s1596_s29 }
  0x8d   : > { %v1870_v36 = vpop.permute.xlu1 %294  ;;  %v1872_v37 = vpop.permute.xlu0 %292 }
  0x8f   : > { %608 = vrot.lane.b32.xlu1 %v1865_v33, %s1597_s30  ;;  %592 = vrot.lane.b32.xlu0 %v1868_v35, %s1597_s30 }
  0x91   : > { %v1878_v38 = vpop.permute.xlu1 %310  ;;  %v1880_v39 = vpop.permute.xlu0 %308 }
  0x93   : > { %407 = vrot.lane.b32.xlu1 %v375_v31, %s1593_s26  ;;  %391 = vrot.lane.b32.xlu0 %v355_v32, %s1593_s26 }
  0x95   : > { %v1884_v40 = vpop.permute.xlu1 %397  ;;  %v1886_v41 = vpop.permute.xlu0 %381 }
  0x97   : > { %455 = vrot.lane.b32.xlu1 %v1865_v33, %s1594_s27  ;;  %439 = vrot.lane.b32.xlu0 %v1868_v35, %s1594_s27 }
  0x99   : > { %v1902_v51 = vpop.permute.xlu1 %399  ;;  %v1904_v56 = vpop.permute.xlu0 %383 }
  0x9b   : > { %610 = vrot.lane.b32.xlu1 %v1889_v43, %s1597_s30  ;;  %594 = vrot.lane.b32.xlu0 %v1892_v44, %s1597_s30 }
  0x9d   : > { %v1912_v59 = vpop.permute.xlu1 %447  ;;  %v1914_v60 = vpop.permute.xlu0 %431 }
  0x9f   : > { %662 = vrot.lane.b32.xlu1 %v289_v57, %s1598_s4  ;;  %646 = vrot.lane.b32.xlu0 %v269_v58, %s1598_s4 }
  0xa1   : > { %v1920_v63 = vpop.permute.xlu1 %449  ;;  %v1922_v1 = vpop.permute.xlu0 %433 }
  0xa3   : > { %457 = vrot.lane.b32.xlu1 %v1889_v43, %s1594_s27  ;;  %441 = vrot.lane.b32.xlu0 %v1892_v44, %s1594_s27  ;;  %v2004_v43 = vld [vmem:[%s1659_s24 + $0xc8] sm:$0xff] }
  0xa4   : > { %v481_v46 = vrot.slane %v2004_v43, 1 }
  0xa5   : > { %v1928_v5 = vpop.permute.xlu1 %501  ;;  %v1930_v7 = vpop.permute.xlu0 %485 }
  0xa7   : > { %509 = vrot.lane.b32.xlu1 %v289_v57, %s1595_s28  ;;  %493 = vrot.lane.b32.xlu0 %v269_v58, %s1595_s28 }
  0xa9   : > { %v313_v15 = vpop.permute.xlu1 %312  ;;  %v297_v18 = vpop.permute.xlu0 %296 }
  0xaa   : > { %v754_v35 = vsel %vm743_vm3, %v1712_v26, %v313_v15  ;;  %v746_v33 = vsel %vm743_vm3, %v1715_v27, %v297_v18 }
  0xab   : > { %664 = vrot.lane.b32.xlu1 %v291_v8, %s1598_s4  ;;  %648 = vrot.lane.b32.xlu0 %v271_v9, %s1598_s4 }
  0xad   : > { %v1944_v22 = vpop.permute.xlu1 %503  ;;  %v1946_v23 = vpop.permute.xlu0 %487 }
  0xaf   : > { %715 = vrot.lane.b32.xlu1 %v378_v19, %s1599_s20  ;;  %699 = vrot.lane.b32.xlu0 %v358_v21, %s1599_s20 }
  0xb1   : > { %v1950_v25 = vpop.permute.xlu1 %554  ;;  %v1952_v30 = vpop.permute.xlu0 %538 }
  0xb3   : > { %320 = vrot.lane.b32.xlu1 %v289_v57, %s1592_s25  ;;  %304 = vrot.lane.b32.xlu0 %v269_v58, %s1592_s25  ;;  %v380_v57 = vsel %vm340_vm1, %v377_v12, %v379_v45  ;;  %v360_v58 = vsel %vm340_vm1, %v357_v14, %v359_v47  ;;  %v1987_v45 = vld [vmem:[%s1659_s24 + $0xc0] sm:$0xff] }
  0xb4   : > { %v480_v50 = vrot.slane %v1987_v45, 1 }
  0xb5   : > { %v1956_v31 = vpop.permute.xlu1 %314  ;;  %v1958_v32 = vpop.permute.xlu0 %298 }
  0xb7   : > { %511 = vrot.lane.b32.xlu1 %v291_v8, %s1595_s28  ;;  %495 = vrot.lane.b32.xlu0 %v271_v9, %s1595_s28 }
  0xb9   : > { %v402_v48 = vpop.permute.xlu1 %401  ;;  %v386_v49 = vpop.permute.xlu0 %385 }
  0xbb   : > { %562 = vrot.lane.b32.xlu1 %v378_v19, %s1596_s29  ;;  %546 = vrot.lane.b32.xlu0 %v358_v21, %s1596_s29 }
  0xbd   : > { %v1966_v3 = vpop.permute.xlu1 %556  ;;  %v1968_v4 = vpop.permute.xlu0 %540 }
  0xbf   : > { %717 = vrot.lane.b32.xlu1 %v380_v57, %s1599_s20  ;;  %701 = vrot.lane.b32.xlu0 %v360_v58, %s1599_s20 }
  0xc1   : > { %v1972_v61 = vpop.permute.xlu1 %604  ;;  %v1974_v62 = vpop.permute.xlu0 %588 }
  0xc3   : > { %322 = vrot.lane.b32.xlu1 %v291_v8, %s1592_s25  ;;  %306 = vrot.lane.b32.xlu0 %v271_v9, %s1592_s25  ;;  %s1329_s25 = sshll.u32 %s1574_s12, 4 }
  0xc4   : > { %p187_p6 = scmp.lt.s32.totalorder %s1329_s25, 31 }
  0xc5   : > { %v1978_v11 = vpop.permute.xlu1 %403  ;;  %v1980_v12 = vpop.permute.xlu0 %387 }
  0xc6   : > { %s2456_s25 = smov (!%p187_p6, %s1329_s25), 31 }
  0xc7   : > { %409 = vrot.lane.b32.xlu1 %v378_v19, %s1593_s26  ;;  %393 = vrot.lane.b32.xlu0 %v358_v21, %s1593_s26 }
  0xc9   : > { %v452_v13 = vpop.permute.xlu1 %451  ;;  %v436_v14 = vpop.permute.xlu0 %435 }
  0xcb   : > { %564 = vrot.lane.b32.xlu1 %v380_v57, %s1596_s29  ;;  %548 = vrot.lane.b32.xlu0 %v360_v58, %s1596_s29 }
  0xcd   : > { %v1989_v8 = vpop.permute.xlu1 %606  ;;  %v1991_v9 = vpop.permute.xlu0 %590 }
  0xcf   : > { %612 = vrot.lane.b32.xlu1 %v1987_v45, %s1597_s30  ;;  %596 = vrot.lane.b32.xlu0 %v1676_v10, %s1597_s30 }
  0xd1   : > { %v659_v19 = vpop.permute.xlu1 %658  ;;  %v643_v21 = vpop.permute.xlu0 %642 }
  0xd3   : > { %411 = vrot.lane.b32.xlu1 %v380_v57, %s1593_s26  ;;  %395 = vrot.lane.b32.xlu0 %v360_v58, %s1593_s26  ;;  %v771_v57 = vsel %vm760_vm4, %v754_v35, %v402_v48  ;;  %v763_v58 = vsel %vm760_vm4, %v746_v33, %v386_v49  ;;  %v744_v33 = vsel %vm743_vm3, %v1666_v2, %v1872_v37  ;;  %s1330_s26 = sshll.u32 %s2454_s13, 5 }
  0xd4   : > { %v788_v15 = vsel %vm777_vm5, %v771_v57, %v452_v13  ;;  %v780_v42 = vsel %vm777_vm5, %v763_v58, %v436_v14  ;;  %v752_v35 = vsel %vm743_vm3, %v1676_v10, %v1880_v39  ;;  %v482_v49 = vsel %vm251_vm0, %v480_v50, %v481_v46 }
  0xd5   : > { %v1999_v47 = vpop.permute.xlu1 %453  ;;  %v2001_v44 = vpop.permute.xlu0 %437  ;;  %v769_v48 = vsel %vm760_vm4, %v752_v35, %v1884_v40  ;;  %v534_v35 = vrot.slane %v2004_v43, 2 }
  0xd6   : > { %v786_v2 = vsel %vm777_vm5, %v769_v48, %v1912_v59 }
  0xd7   : > { %459 = vrot.lane.b32.xlu1 %v1987_v45, %s1594_s27  ;;  %443 = vrot.lane.b32.xlu0 %v1676_v10, %s1594_s27  ;;  %v803_v13 = vsel %vm794_vm6, %v786_v2, %v1928_v5 }
  0xd8   : > { %v820_v50 = vsel %vm811_vm7, %v803_v13, %v1950_v25 }
  0xd9   : > { %v506_v27 = vpop.permute.xlu1 %505  ;;  %v490_v18 = vpop.permute.xlu0 %489  ;;  %v837_v59 = vsel %vm828_vm8, %v820_v50, %v1972_v61 }
  0xda   : > { %v2021_v34 = vsel %vm794_vm6, %v788_v15, %v506_v27  ;;  %v2024_v55 = vsel %vm794_vm6, %v780_v42, %v490_v18  ;;  %v761_v42 = vsel %vm760_vm4, %v744_v33, %v1886_v41  ;;  %v854_v5 = vsel %vm845_vm9, %v837_v59, %v659_v19 }
  0xdb   : > { %614 = vrot.lane.b32.xlu1 %v2004_v43, %s1597_s30  ;;  %598 = vrot.lane.b32.xlu0 %v1671_v6, %s1597_s30  ;;  %v778_v10 = vsel %vm777_vm5, %v761_v42, %v1914_v60  ;;  %v747_v15 = vsel %vm743_vm3, %v1721_v29, %v1958_v32  ;;  %v533_v27 = vrot.slane %v1987_v45, 2 }
  0xdc   : > { %v795_v40 = vsel %vm794_vm6, %v778_v10, %v1930_v7  ;;  %v764_v33 = vsel %vm760_vm4, %v747_v15, %v1980_v12 }
  0xdd   : > { %v661_v37 = vpop.permute.xlu1 %660  ;;  %v645_v39 = vpop.permute.xlu0 %644  ;;  %v812_v41 = vsel %vm811_vm7, %v795_v40, %v1952_v30  ;;  %v223_v30 = vld [vmem:[%s1659_s24 + $0xd0] sm:$0x3]  ;;  %v781_v32 = vsel %vm777_vm5, %v764_v33, %v2001_v44 }
  0xde   : > { %v829_v60 = vsel %vm828_vm8, %v812_v41, %v1974_v62  ;;  %v483_v61 = vrot.slane %v223_v30, 1 }
  0xdf   : > { %666 = vrot.lane.b32.xlu1 %v482_v49, %s1598_s4  ;;  %650 = vrot.lane.b32.xlu0 %v1689_v17, %s1598_s4  ;;  %v846_v7 = vsel %vm845_vm9, %v829_v60, %v643_v21  ;;  %v755_v21 = vsel %vm743_vm3, %v1718_v28, %v1956_v31 }
  0xe0   : > { %v772_v18 = vsel %vm760_vm4, %v755_v21, %v1978_v11  ;;  %v484_v31 = vsel %vm251_vm0, %v481_v46, %v483_v61  ;;  %v753_v46 = vsel %vm743_vm3, %v1671_v6, %v1878_v38 }
  0xe1   : > { %v712_v25 = vpop.permute.xlu1 %711  ;;  %v696_v14 = vpop.permute.xlu0 %695  ;;  %v789_v29 = vsel %vm777_vm5, %v772_v18, %v1999_v47  ;;  %v535_v47 = vsel %vm340_vm1, %v533_v27, %v534_v35 }
  0xe2   : > { %v871_v57 = vsel %vm862_vm10, %v854_v5, %v712_v25  ;;  %v863_v58 = vsel %vm862_vm10, %v846_v7, %v696_v14  ;;  %v225_v7 = vld [vmem:[%s1659_s24 + $0xe0] sm:$0xff] }
  0xe3   : > { %461 = vrot.lane.b32.xlu1 %v2004_v43, %s1594_s27  ;;  %1413 = vmatprep.mubr.msk.f32.mxu1 %vm891_vm11, %v871_v57  ;;  %v770_v43 = vsel %vm760_vm4, %v753_v46, %v1902_v51  ;;  %v638_v14 = vrot.slane %v225_v7, 1  ;;  %v2434_v57 = vld [vmem:[#allocation6_spill] sm:$0xff] }
  0xe4   : > { %445 = vrot.lane.b32.xlu0 %v1671_v6, %s1594_s27  ;;  %1401 = vmatprep.mubr.msk.f32.mxu0 %vm891_vm11, %v863_v58  ;;  %s190_s27 = sadd.s32 %s1330_s26, %s2456_s25 }
  0xe5   : > { %v317_v62 = vpop.permute.xlu1 %316  ;;  %v301_v19 = vpop.permute.xlu0 %300  ;;  %s1331_s12 = sshll.u32 %s190_s27, 3 }
  0xe6   : > { %v756_v13 = vsel %vm743_vm3, %v1779_v52, %v317_v62  ;;  %v224_v52 = vld [vmem:[%s1659_s24 + $0xd8] sm:$0xff] }
  0xe7   : > { %513 = vrot.lane.b32.xlu1 %v482_v49, %s1595_s28  ;;  %v637_v25 = vrot.slane %v224_v52, 1 }
  0xe8   : > { %497 = vrot.lane.b32.xlu0 %v1689_v17, %s1595_s28  ;;  %v745_v17 = vsel %vm743_vm3, %v1662_v0, %v1870_v36  ;;  %v787_v0 = vsel %vm777_vm5, %v770_v43, %v1920_v63 }
  0xe9   : > { %v508_v45 = vpop.permute.xlu1 %507  ;;  %v492_v48 = vpop.permute.xlu0 %491  ;;  %v762_v44 = vsel %vm760_vm4, %v745_v17, %v1904_v56  ;;  %v804_v51 = vsel %vm794_vm6, %v787_v0, %v1944_v22 }
  0xea   : > { %v2092_v11 = vsel %vm794_vm6, %v789_v29, %v508_v45  ;;  %v2095_v12 = vsel %vm794_vm6, %v781_v32, %v492_v48  ;;  %v779_v36 = vsel %vm777_vm5, %v762_v44, %v1922_v1  ;;  %v821_v42 = vsel %vm811_vm7, %v804_v51, %v1966_v3  ;;  %v2435_v29 = vld [vmem:[#allocation2_spill] sm:$0xff]  ;;  %v2436_v48 = vld [vmem:[#allocation3_spill] sm:$0xff] }
  0xeb   : > { %668 = vrot.lane.b32.xlu1 %v484_v31, %s1598_s4  ;;  %v796_v56 = vsel %vm794_vm6, %v779_v36, %v1946_v23  ;;  %v838_v63 = vsel %vm828_vm8, %v821_v42, %v1989_v8  ;;  %v536_v8 = vrot.slane %v223_v30, 2 }
  0xec   : > { %652 = vrot.lane.b32.xlu0 %v1686_v16, %s1598_s4  ;;  %v813_v49 = vsel %vm811_vm7, %v796_v56, %v1968_v4  ;;  %v855_v22 = vsel %vm845_vm9, %v838_v63, %v661_v37 }
  0xed   : > { %v2115_v6 = vpop.permute.xlu1 %558  ;;  %v2117_v38 = vpop.permute.xlu0 %542  ;;  %v830_v1 = vsel %vm828_vm8, %v813_v49, %v1991_v9  ;;  %v2438_v49 = vld [vmem:[#allocation5_spill] sm:$0xff] }
  0xee   : > { %v847_v23 = vsel %vm845_vm9, %v830_v1, %v645_v39  ;;  %v537_v39 = vsel %vm340_vm1, %v534_v35, %v536_v8  ;;  %v690_v35 = vrot.slane %v224_v52, 2 }
  0xef   : > { %719 = vrot.lane.b32.xlu1 %v535_v47, %s1599_s20 }
  0xf0   : > { %703 = vrot.lane.b32.xlu0 %v1698_v20, %s1599_s20 }
  0xf1   : > { %v714_v2 = vpop.permute.xlu1 %713  ;;  %v698_v3 = vpop.permute.xlu0 %697 }
  0xf2   : > { %v872_v10 = vsel %vm862_vm10, %v855_v22, %v714_v2  ;;  %v864_v4 = vsel %vm862_vm10, %v847_v23, %v698_v3 }
  0xf3   : > { %515 = vrot.lane.b32.xlu1 %v484_v31, %s1595_s28  ;;  %1414 = vmatmul.mubr.msk.f32.vlgmr.msra.gmra.mrb[0].mxu1 %vm891_vm11, %v872_v10  ;;  %v691_v31 = vrot.slane %v225_v7, 2  ;;  %v822_v10 = vsel %vm811_vm7, %v2021_v34, %v2115_v6 }
  0xf4   : > { %499 = vrot.lane.b32.xlu0 %v1686_v16, %s1595_s28  ;;  %1402 = vmatmul.mubr.msk.f32.vlgmr.msra.gmra.mrb[0].mxu0 %vm891_vm11, %v864_v4  ;;  %v748_v16 = vsel %vm743_vm3, %v1782_v53, %v301_v19  ;;  %v814_v4 = vsel %vm811_vm7, %v2024_v55, %v2117_v38 }
  0xf5   : > { %v319_v9 = vpop.permute.xlu1 %318  ;;  %v303_v37 = vpop.permute.xlu0 %302  ;;  %v692_v17 = vsel %vm340_vm1, %v690_v35, %v691_v31 }
  0xf6   : > { %v757_v30 = vsel %vm743_vm3, %v1792_v54, %v319_v9  ;;  %v749_v58 = vsel %vm743_vm3, %v2434_v57, %v303_v37 }
  0xf7   : > { %566 = vrot.lane.b32.xlu1 %v535_v47, %s1596_s29  ;;  %v2437_v47 = vld [vmem:[#allocation4_spill] sm:$0xff] }
  0xf8   : > { %550 = vrot.lane.b32.xlu0 %v1698_v20, %s1596_s29 }
  0xf9   : > { %v406_v40 = vpop.permute.xlu1 %405  ;;  %v390_v50 = vpop.permute.xlu0 %389 }
  0xfa   : > { %v773_v41 = vsel %vm760_vm4, %v756_v13, %v406_v40  ;;  %v765_v59 = vsel %vm760_vm4, %v748_v16, %v390_v50 }
  0xfb   : > { %721 = vrot.lane.b32.xlu1 %v537_v39, %s1599_s20 }
  0xfc   : > { %705 = vrot.lane.b32.xlu0 %v1705_v24, %s1599_s20 }
  0xfd   : > { %v2156_v20 = vpop.permute.xlu1 %560  ;;  %v2158_v60 = vpop.permute.xlu0 %544 }
  0xff   : > { %568 = vrot.lane.b32.xlu1 %v537_v39, %s1596_s29 }
 0x100   : > { %552 = vrot.lane.b32.xlu0 %v1705_v24, %s1596_s29  ;;  %v226_v24 = vld [vmem:[%s1659_s24 + $0xe8] sm:$0x3] }
 0x101   : > { %v609_v53 = vpop.permute.xlu1 %608  ;;  %v593_v5 = vpop.permute.xlu0 %592  ;;  %v640_v15 = vrot.slane %v226_v24, 1  ;;  %v693_v46 = vrot.slane %v226_v24, 2 }
 0x102   : > { %v839_v8 = vsel %vm828_vm8, %v822_v10, %v609_v53  ;;  %v831_v9 = vsel %vm828_vm8, %v814_v4, %v593_v5  ;;  %v823_v5 = vsel %vm811_vm7, %v2092_v11, %v2156_v20  ;;  %v2439_v20 = vld [vmem:[#allocation7_spill] sm:$0xff] }
 0x103   : > { %616 = vrot.lane.b32.xlu1 %v224_v52, %s1597_s30  ;;  %v641_v32 = vsel %vm251_vm0, %v638_v14, %v640_v15  ;;  %v694_v0 = vsel %vm340_vm1, %v691_v31, %v693_v46 }
 0x104   : > { %600 = vrot.lane.b32.xlu0 %v1712_v26, %s1597_s30  ;;  %v639_v26 = vsel %vm251_vm0, %v637_v25, %v638_v14 }
 0x105   : > { %v408_v61 = vpop.permute.xlu1 %407  ;;  %v392_v62 = vpop.permute.xlu0 %391 }
 0x106   : > { %v774_v19 = vsel %vm760_vm4, %v757_v30, %v408_v61  ;;  %v766_v21 = vsel %vm760_vm4, %v749_v58, %v392_v62 }
 0x107   : > { %618 = vrot.lane.b32.xlu1 %v225_v7, %s1597_s30  ;;  %v815_v7 = vsel %vm811_vm7, %v2095_v12, %v2158_v60 }
 0x108   : > { %602 = vrot.lane.b32.xlu0 %v1718_v28, %s1597_s30  ;;  %s2319_s30 = scalar_lea.vmem %s2415_s3, %s1331_s12 }
 0x109   : > { %v456_v27 = vpop.permute.xlu1 %455  ;;  %v440_v54 = vpop.permute.xlu0 %439 }
 0x10a   : > { %v790_v18 = vsel %vm777_vm5, %v773_v41, %v456_v27  ;;  %v782_v33 = vsel %vm777_vm5, %v765_v59, %v440_v54 }
 0x10b   : > { %670 = vrot.lane.b32.xlu1 %v639_v26, %s1598_s4 }
 0x10c   : > { %654 = vrot.lane.b32.xlu0 %v2435_v29, %s1598_s4 }
 0x10d   : > { %v611_v45 = vpop.permute.xlu1 %610  ;;  %v595_v28 = vpop.permute.xlu0 %594 }
 0x10e   : > { %v840_v25 = vsel %vm828_vm8, %v823_v5, %v611_v45  ;;  %v832_v14 = vsel %vm828_vm8, %v815_v7, %v595_v28 }
 0x10f   : > { %672 = vrot.lane.b32.xlu1 %v641_v32, %s1598_s4 }
 0x110   : > { %656 = vrot.lane.b32.xlu0 %v2436_v48, %s1598_s4 }
 0x111   : > { %v663_v43 = vpop.permute.xlu1 %662  ;;  %v647_v44 = vpop.permute.xlu0 %646 }
 0x112   : > { %v856_v37 = vsel %vm845_vm9, %v839_v8, %v663_v43  ;;  %v848_v39 = vsel %vm845_vm9, %v831_v9, %v647_v44 }
 0x113   : > { %723 = vrot.lane.b32.xlu1 %v692_v17, %s1599_s20 }
 0x114   : > { %707 = vrot.lane.b32.xlu0 %v2437_v47, %s1599_s20 }
 0x115   : > { %v458_v36 = vpop.permute.xlu1 %457  ;;  %v442_v51 = vpop.permute.xlu0 %441 }
 0x116   : > { %v791_v56 = vsel %vm777_vm5, %v774_v19, %v458_v36  ;;  %v783_v42 = vsel %vm777_vm5, %v766_v21, %v442_v51  ;;  %v2440_v19 = vld [vmem:[#allocation8_spill] sm:$0xff] }
 0x117   : > { %725 = vrot.lane.b32.xlu1 %v694_v0, %s1599_s20 }
 0x118   : > { %709 = vrot.lane.b32.xlu0 %v2438_v49, %s1599_s20 }
 0x119   : > { %v510_v63 = vpop.permute.xlu1 %509  ;;  %v494_v1 = vpop.permute.xlu0 %493 }
 0x11a   : > { %v2199_v22 = vsel %vm794_vm6, %v790_v18, %v510_v63  ;;  %v2202_v23 = vsel %vm794_vm6, %v782_v33, %v494_v1 }
 0x11d   : > { %v665_v2 = vpop.permute.xlu1 %664  ;;  %v649_v3 = vpop.permute.xlu0 %648 }
 0x11e   : > { %v857_v30 = vsel %vm845_vm9, %v840_v25, %v665_v2  ;;  %v849_v57 = vsel %vm845_vm9, %v832_v14, %v649_v3 }
 0x121   : > { %v716_v13 = vpop.permute.xlu1 %715  ;;  %v700_v16 = vpop.permute.xlu0 %699 }
 0x122   : > { %v873_v40 = vsel %vm862_vm10, %v856_v37, %v716_v13  ;;  %v865_v50 = vsel %vm862_vm10, %v848_v39, %v700_v16 }
 0x123   : > { %1404 = vmatprep.mubr.msk.f32.mxu0 %vm891_vm11, %v865_v50  ;;  %1416 = vmatprep.mubr.msk.f32.mxu1 %vm891_vm11, %v873_v40 }
 0x125   : > { %v321_v34 = vpop.permute.xlu1 %320  ;;  %v305_v55 = vpop.permute.xlu0 %304 }
 0x126   : > { %v758_v60 = vsel %vm743_vm3, %v2439_v20, %v321_v34  ;;  %v750_v21 = vsel %vm743_vm3, %v2440_v19, %v305_v55 }
 0x129   : > { %v512_v6 = vpop.permute.xlu1 %511  ;;  %v496_v38 = vpop.permute.xlu0 %495 }
 0x12a   : > { %v808_v41 = vsel %vm794_vm6, %v791_v56, %v512_v6  ;;  %v800_v59 = vsel %vm794_vm6, %v783_v42, %v496_v38 }
 0x12d   : > { %v563_v52 = vpop.permute.xlu1 %562  ;;  %v547_v53 = vpop.permute.xlu0 %546 }
 0x12e   : > { %v824_v42 = vsel %vm811_vm7, %v2199_v22, %v563_v52  ;;  %v816_v49 = vsel %vm811_vm7, %v2202_v23, %v547_v53 }
 0x131   : > { %v718_v58 = vpop.permute.xlu1 %717  ;;  %v702_v61 = vpop.permute.xlu0 %701 }
 0x132   : > { %v874_v62 = vsel %vm862_vm10, %v857_v30, %v718_v58  ;;  %v866_v24 = vsel %vm862_vm10, %v849_v57, %v702_v61 }
 0x133   : > { %1405 = vmatmul.mubr.msk.f32.gmra.mrb[2].mxu0 %vm891_vm11, %v866_v24  ;;  %1417 = vmatmul.mubr.msk.f32.gmra.mrb[2].mxu1 %vm891_vm11, %v874_v62 }
 0x135   : > { %v2234_v11 = vpop.permute.xlu1 %322  ;;  %v2236_v12 = vpop.permute.xlu0 %306 }
 0x139   : > { %v410_v26 = vpop.permute.xlu1 %409  ;;  %v394_v15 = vpop.permute.xlu0 %393 }
 0x13a   : > { %v775_v27 = vsel %vm760_vm4, %v758_v60, %v410_v26  ;;  %v767_v54 = vsel %vm760_vm4, %v750_v21, %v394_v15  ;;  %v2441_v60 = vld [vmem:[#allocation9_spill] sm:$0xff]  ;;  %v2442_v15 = vld [vmem:[#allocation10_spill] sm:$0xff] }
 0x13b   : > { %v759_v19 = vsel %vm743_vm3, %v2441_v60, %v2234_v11 }
 0x13d   : > { %v565_v18 = vpop.permute.xlu1 %564  ;;  %v549_v33 = vpop.permute.xlu0 %548 }
 0x13e   : > { %v825_v13 = vsel %vm811_vm7, %v808_v41, %v565_v18  ;;  %v817_v16 = vsel %vm811_vm7, %v800_v59, %v549_v33  ;;  %v751_v18 = vsel %vm743_vm3, %v2442_v15, %v2236_v12 }
 0x141   : > { %v613_v35 = vpop.permute.xlu1 %612  ;;  %v597_v31 = vpop.permute.xlu0 %596 }
 0x142   : > { %v841_v63 = vsel %vm828_vm8, %v824_v42, %v613_v35  ;;  %v833_v1 = vsel %vm828_vm8, %v816_v49, %v597_v31 }
 0x145   : > { %v412_v29 = vpop.permute.xlu1 %411  ;;  %v396_v32 = vpop.permute.xlu0 %395 }
 0x146   : > { %v768_v35 = vsel %vm760_vm4, %v751_v18, %v396_v32 }
 0x149   : > { %v460_v45 = vpop.permute.xlu1 %459  ;;  %v444_v28 = vpop.permute.xlu0 %443 }
 0x14a   : > { %v792_v58 = vsel %vm777_vm5, %v775_v27, %v460_v45  ;;  %v784_v62 = vsel %vm777_vm5, %v767_v54, %v444_v28  ;;  %v776_v27 = vsel %vm760_vm4, %v759_v19, %v412_v29 }
 0x14d   : > { %v615_v48 = vpop.permute.xlu1 %614  ;;  %v599_v17 = vpop.permute.xlu0 %598 }
 0x14e   : > { %v842_v40 = vsel %vm828_vm8, %v825_v13, %v615_v48  ;;  %v834_v50 = vsel %vm828_vm8, %v817_v16, %v599_v17 }
 0x151   : > { %v667_v46 = vpop.permute.xlu1 %666  ;;  %v651_v43 = vpop.permute.xlu0 %650 }
 0x152   : > { %v858_v2 = vsel %vm845_vm9, %v841_v63, %v667_v46  ;;  %v850_v10 = vsel %vm845_vm9, %v833_v1, %v651_v43 }
 0x155   : > { %v462_v44 = vpop.permute.xlu1 %461 }
 0x156   : > { %v446_v47 = vpop.permute.xlu0 %445  ;;  %v793_v31 = vsel %vm777_vm5, %v776_v27, %v462_v44 }
 0x157   : > { %v785_v48 = vsel %vm777_vm5, %v768_v35, %v446_v47 }
 0x159   : > { %v514_v0 = vpop.permute.xlu1 %513 }
 0x15a   : > { %v498_v36 = vpop.permute.xlu0 %497  ;;  %v809_v24 = vsel %vm794_vm6, %v792_v58, %v514_v0 }
 0x15b   : > { %v801_v21 = vsel %vm794_vm6, %v784_v62, %v498_v36 }
 0x15d   : > { %v669_v51 = vpop.permute.xlu1 %668 }
 0x15e   : > { %v653_v56 = vpop.permute.xlu0 %652  ;;  %v859_v34 = vsel %vm845_vm9, %v842_v40, %v669_v51 }
 0x15f   : > { %v851_v6 = vsel %vm845_vm9, %v834_v50, %v653_v56 }
 0x161   : > { %v720_v3 = vpop.permute.xlu1 %719 }
 0x162   : > { %v875_v4 = vsel %vm862_vm10, %v858_v2, %v720_v3  ;;  %v704_v8 = vpop.permute.xlu0 %703  ;;  %v2305_v2 = vld [vmem:[%s2414_s2] ss:$0 sm:$0xff] }
 0x163   : > { %v867_v9 = vsel %vm862_vm10, %v850_v10, %v704_v8  ;;  %1419 = vmatprep.mubr.msk.f32.mxu1 %vm891_vm11, %v875_v4 }
 0x164   : > { %1407 = vmatprep.mubr.msk.f32.mxu0 %vm891_vm11, %v867_v9 }
 0x165   : > { %v516_v22 = vpop.permute.xlu1 %515 }
 0x166   : > { %v500_v23 = vpop.permute.xlu0 %499  ;;  %v810_v17 = vsel %vm794_vm6, %v793_v31, %v516_v22 }
 0x167   : > { %v802_v43 = vsel %vm794_vm6, %v785_v48, %v500_v23 }
 0x169   : > { %v567_v37 = vpop.permute.xlu1 %566 }
 0x16a   : > { %v551_v39 = vpop.permute.xlu0 %550  ;;  %v826_v26 = vsel %vm811_vm7, %v809_v24, %v567_v37 }
 0x16b   : > { %v818_v33 = vsel %vm811_vm7, %v801_v21, %v551_v39 }
 0x16d   : > { %v722_v55 = vpop.permute.xlu1 %721 }
 0x16e   : > { %v876_v38 = vsel %vm862_vm10, %v859_v34, %v722_v55  ;;  %v706_v52 = vpop.permute.xlu0 %705 }
 0x16f   : > { %v868_v53 = vsel %vm862_vm10, %v851_v6, %v706_v52  ;;  %1420 = vmatmul.mubr.msk.f32.gmra.mrb[4].mxu1 %vm891_vm11, %v876_v38 }
 0x170   : > { %1408 = vmatmul.mubr.msk.f32.gmra.mrb[4].mxu0 %vm891_vm11, %v868_v53  ;;  %v1089_v53 = vlaneseq }
 0x171   : > { %v569_v41 = vpop.permute.xlu1 %568 }
 0x172   : > { %v553_v59 = vpop.permute.xlu0 %552  ;;  %v827_v32 = vsel %vm811_vm7, %v810_v17, %v569_v41 }
 0x173   : > { %v819_v0 = vsel %vm811_vm7, %v802_v43, %v553_v59 }
 0x175   : > { %v617_v5 = vpop.permute.xlu1 %616 }
 0x176   : > { %v601_v7 = vpop.permute.xlu0 %600  ;;  %v843_v54 = vsel %vm828_vm8, %v826_v26, %v617_v5  ;;  %v2313_v5 = vand.u32 127, %v1089_v53 }
 0x177   : > { %v835_v11 = vsel %vm828_vm8, %v818_v33, %v601_v7 }
 0x178   : > { %vm1091_vm12 = vcmp.lt.s32.totalorder %v2313_v5, 8 }
 0x179   : > { %v619_v25 = vpop.permute.xlu1 %618 }
 0x17a   : > { %v603_v14 = vpop.permute.xlu0 %602  ;;  %v844_v36 = vsel %vm828_vm8, %v827_v32, %v619_v25 }
 0x17b   : > { %v836_v47 = vsel %vm828_vm8, %v819_v0, %v603_v14 }
 0x17d   : > { %v671_v30 = vpop.permute.xlu1 %670 }
 0x17e   : > { %v655_v57 = vpop.permute.xlu0 %654  ;;  %v860_v45 = vsel %vm845_vm9, %v843_v54, %v671_v30 }
 0x17f   : > { %v852_v12 = vsel %vm845_vm9, %v835_v11, %v655_v57 }
 0x181   : > { %v673_v61 = vpop.permute.xlu1 %672 }
 0x182   : > { %v657_v20 = vpop.permute.xlu0 %656  ;;  %v861_v51 = vsel %vm845_vm9, %v844_v36, %v673_v61 }
 0x183   : > { %v853_v42 = vsel %vm845_vm9, %v836_v47, %v657_v20 }
 0x185   : > { %v724_v28 = vpop.permute.xlu1 %723 }
 0x186   : > { %v877_v29 = vsel %vm862_vm10, %v860_v45, %v724_v28  ;;  %v708_v46 = vpop.permute.xlu0 %707 }
 0x187   : > { %v869_v44 = vsel %vm862_vm10, %v852_v12, %v708_v46  ;;  %1422 = vmatprep.mubr.msk.f32.mxu1 %vm891_vm11, %v877_v29 }
 0x188   : > { %1410 = vmatprep.mubr.msk.f32.mxu0 %vm891_vm11, %v869_v44 }
 0x189   : > { %v726_v56 = vpop.permute.xlu1 %725 }
 0x18a   : > { %v878_v49 = vsel %vm862_vm10, %v861_v51, %v726_v56  ;;  %v710_v63 = vpop.permute.xlu0 %709 }
 0x18b   : > { %v870_v1 = vsel %vm862_vm10, %v853_v42, %v710_v63  ;;  %1423 = vmatmul.mubr.msk.f32.gmra.mrb[6].mxu1 %vm891_vm11, %v878_v49 }
 0x18c   : > { %1411 = vmatmul.mubr.msk.f32.gmra.mrb[6].mxu0 %vm891_vm11, %v870_v1 }
 0x1c6   : > { %v1415_v3 = vpop.f32.mrb[0].mxu1 }
 0x1c7   : > { %v1403_v10 = vpop.f32.mrb[0].mxu0  ;;  %v1056_v4 = vadd.f32 %v1415_v3, %v2305_v2  ;;  %v1050_v8 = vpop.f32.mrb[1].mxu1 }
 0x1c8   : > { %v1016_v9 = vadd.f32 %v1403_v10, %v2305_v2  ;;  %v1010_v22 = vpop.f32.mrb[1].mxu0  ;;  %v1051_v23 = vadd.f32 %v2305_v2, %v1050_v8 }
 0x1c9   : > { %v1361_v37 = vmul.f32 -1.442695, %v1056_v4  ;;  %v1011_v39 = vadd.f32 %v2305_v2, %v1010_v22  ;;  %v1101_v7 = vmax.f32 %v1056_v4, 0.0 }
 0x1ca   : > { %v1353_v13 = vmul.f32 -1.442695, %v1016_v9  ;;  %v1360_v16 = vmul.f32 -1.442695, %v1051_v23  ;;  %v1093_v14 = vmax.f32 %v1016_v9, 0.0  ;;  %v1100_v24 = vmax.f32 %v1051_v23, 0.0 }
 0x1cb   : > { %1488 = vpow2.f32 %v1361_v37  ;;  %v1352_v40 = vmul.f32 -1.442695, %v1011_v39  ;;  %v1092_v58 = vmax.f32 %v1011_v39, 0.0 }
 0x1cc   : > { %1490 = vpow2.f32 %v1353_v13 }
 0x1cd   : > { %1492 = vpow2.f32 %v1352_v40 }
 0x1ce   : > { %1494 = vpow2.f32 %v1360_v16 }
 0x1d5   : > { %v1489_v50 = vpop.eup %1488 }
 0x1d6   : > { %v1491_v34 = vpop.eup %1490  ;;  %v1165_v55 = vadd.f32 1.0, %v1489_v50 }
 0x1d7   : > { %v1493_v6 = vpop.eup %1492  ;;  %v1157_v38 = vadd.f32 1.0, %v1491_v34 }
 0x1d8   : > { %v1495_v52 = vpop.eup %1494  ;;  %1496 = vrcp.f32 %v1165_v55  ;;  %v1156_v41 = vadd.f32 1.0, %v1493_v6 }
 0x1d9   : > { %1498 = vrcp.f32 %v1157_v38  ;;  %v1164_v59 = vadd.f32 1.0, %v1495_v52 }
 0x1da   : > { %1500 = vrcp.f32 %v1156_v41 }
 0x1db   : > { %1502 = vrcp.f32 %v1164_v59 }
 0x1e2   : > { %v1497_v25 = vpop.eup %1496 }
 0x1e3   : > { %v1499_v30 = vpop.eup %1498  ;;  %v1213_v57 = vsel %vm1091_vm12, %v1101_v7, %v1497_v25 }
 0x1e4   : > { %v1501_v61 = vpop.eup %1500  ;;  %v1205_v62 = vsel %vm1091_vm12, %v1093_v14, %v1499_v30  ;;  %1230 = vst.msk [vmem:[%s2319_s30 + $0x48] sm:$0xff] %vm1220_vm13, %v1213_v57 }
 0x1e5   : > { %v1503_v20 = vpop.eup %1502  ;;  %1222 = vst.msk [vmem:[%s2319_s30 + $0x8] sm:$0xff] %vm1220_vm13, %v1205_v62  ;;  %v1204_v60 = vsel %vm1091_vm12, %v1092_v58, %v1501_v61 }
 0x1e6   : > { %1221 = vst.msk [vmem:[%s2319_s30] sm:$0xff] %vm1220_vm13, %v1204_v60  ;;  %v1212_v19 = vsel %vm1091_vm12, %v1100_v24, %v1503_v20 }
 0x1e7   : > { %1229 = vst.msk [vmem:[%s2319_s30 + $0x40] sm:$0xff] %vm1220_vm13, %v1212_v19 }
 0x206   : > { %v1406_v21 = vpop.f32.mrb[2].mxu0  ;;  %v1418_v26 = vpop.f32.mrb[2].mxu1 }
 0x207   : > { %v1026_v15 = vadd.f32 %v1406_v21, %v2305_v2  ;;  %v1066_v18 = vadd.f32 %v1418_v26, %v2305_v2  ;;  %v1020_v27 = vpop.f32.mrb[3].mxu0  ;;  %v1060_v33 = vpop.f32.mrb[3].mxu1 }
 0x208   : > { %v1021_v54 = vadd.f32 %v2305_v2, %v1020_v27  ;;  %v1061_v35 = vadd.f32 %v2305_v2, %v1060_v33 }
 0x209   : > { %v1355_v31 = vmul.f32 -1.442695, %v1026_v15  ;;  %v1363_v11 = vmul.f32 -1.442695, %v1066_v18  ;;  %v1095_v0 = vmax.f32 %v1026_v15, 0.0  ;;  %v1103_v47 = vmax.f32 %v1066_v18, 0.0 }
 0x20a   : > { %v1354_v45 = vmul.f32 -1.442695, %v1021_v54  ;;  %v1362_v28 = vmul.f32 -1.442695, %v1061_v35  ;;  %v1094_v42 = vmax.f32 %v1021_v54, 0.0  ;;  %v1102_v1 = vmax.f32 %v1061_v35, 0.0 }
 0x20b   : > { %1504 = vpow2.f32 %v1355_v31 }
 0x20c   : > { %1506 = vpow2.f32 %v1363_v11 }
 0x20d   : > { %1508 = vpow2.f32 %v1354_v45 }
 0x20e   : > { %1510 = vpow2.f32 %v1362_v28 }
 0x215   : > { %v1505_v48 = vpop.eup %1504 }
 0x216   : > { %v1507_v17 = vpop.eup %1506  ;;  %v1159_v12 = vadd.f32 1.0, %v1505_v48 }
 0x217   : > { %v1509_v29 = vpop.eup %1508  ;;  %v1167_v46 = vadd.f32 1.0, %v1507_v17 }
 0x218   : > { %v1511_v43 = vpop.eup %1510  ;;  %1512 = vrcp.f32 %v1159_v12  ;;  %v1158_v32 = vadd.f32 1.0, %v1509_v29 }
 0x219   : > { %1514 = vrcp.f32 %v1167_v46  ;;  %v1166_v44 = vadd.f32 1.0, %v1511_v43 }
 0x21a   : > { %1516 = vrcp.f32 %v1158_v32 }
 0x21b   : > { %1518 = vrcp.f32 %v1166_v44 }
 0x222   : > { %v1513_v36 = vpop.eup %1512 }
 0x223   : > { %v1515_v51 = vpop.eup %1514  ;;  %v1207_v56 = vsel %vm1091_vm12, %v1095_v0, %v1513_v36 }
 0x224   : > { %v1517_v49 = vpop.eup %1516  ;;  %1224 = vst.msk [vmem:[%s2319_s30 + $0x18] sm:$0xff] %vm1220_vm13, %v1207_v56  ;;  %v1215_v63 = vsel %vm1091_vm12, %v1103_v47, %v1515_v51 }
 0x225   : > { %v1519_v3 = vpop.eup %1518  ;;  %1232 = vst.msk [vmem:[%s2319_s30 + $0x58] sm:$0xff] %vm1220_vm13, %v1215_v63  ;;  %v1206_v10 = vsel %vm1091_vm12, %v1094_v42, %v1517_v49 }
 0x226   : > { %1223 = vst.msk [vmem:[%s2319_s30 + $0x10] sm:$0xff] %vm1220_vm13, %v1206_v10  ;;  %v1214_v4 = vsel %vm1091_vm12, %v1102_v1, %v1519_v3 }
 0x227   : > { %1231 = vst.msk [vmem:[%s2319_s30 + $0x50] sm:$0xff] %vm1220_vm13, %v1214_v4 }
 0x242   : > { %v1421_v8 = vpop.f32.mrb[4].mxu1 }
 0x243   : > { %v1409_v9 = vpop.f32.mrb[4].mxu0  ;;  %v1076_v22 = vadd.f32 %v1421_v8, %v2305_v2  ;;  %v1070_v23 = vpop.f32.mrb[5].mxu1 }
 0x244   : > { %v1036_v37 = vadd.f32 %v1409_v9, %v2305_v2  ;;  %v1030_v39 = vpop.f32.mrb[5].mxu0  ;;  %v1071_v13 = vadd.f32 %v2305_v2, %v1070_v23 }
 0x245   : > { %v1365_v16 = vmul.f32 -1.442695, %v1076_v22  ;;  %v1031_v40 = vadd.f32 %v2305_v2, %v1030_v39  ;;  %v1105_v14 = vmax.f32 %v1076_v22, 0.0 }
 0x246   : > { %v1357_v50 = vmul.f32 -1.442695, %v1036_v37  ;;  %v1364_v34 = vmul.f32 -1.442695, %v1071_v13  ;;  %v1097_v57 = vmax.f32 %v1036_v37, 0.0  ;;  %v1104_v15 = vmax.f32 %v1071_v13, 0.0 }
 0x247   : > { %1520 = vpow2.f32 %v1365_v16  ;;  %v1356_v55 = vmul.f32 -1.442695, %v1031_v40  ;;  %v1096_v24 = vmax.f32 %v1031_v40, 0.0 }
 0x248   : > { %1522 = vpow2.f32 %v1357_v50 }
 0x249   : > { %1524 = vpow2.f32 %v1356_v55 }
 0x24a   : > { %1526 = vpow2.f32 %v1364_v34 }
 0x251   : > { %v1521_v6 = vpop.eup %1520 }
 0x252   : > { %v1523_v38 = vpop.eup %1522  ;;  %v1169_v52 = vadd.f32 1.0, %v1521_v6 }
 0x253   : > { %v1525_v53 = vpop.eup %1524  ;;  %v1161_v41 = vadd.f32 1.0, %v1523_v38 }
 0x254   : > { %v1527_v59 = vpop.eup %1526  ;;  %1528 = vrcp.f32 %v1169_v52  ;;  %v1160_v7 = vadd.f32 1.0, %v1525_v53 }
 0x255   : > { %1530 = vrcp.f32 %v1161_v41  ;;  %v1168_v25 = vadd.f32 1.0, %v1527_v59 }
 0x256   : > { %1532 = vrcp.f32 %v1160_v7 }
 0x257   : > { %1534 = vrcp.f32 %v1168_v25 }
 0x25e   : > { %v1529_v30 = vpop.eup %1528  ;;  %v1424_v58 = vpop.f32.mrb[6].mxu1 }
 0x25f   : > { %v1531_v61 = vpop.eup %1530  ;;  %v1217_v62 = vsel %vm1091_vm12, %v1105_v14, %v1529_v30  ;;  %v1412_v20 = vpop.f32.mrb[6].mxu0  ;;  %v1086_v60 = vadd.f32 %v1424_v58, %v2305_v2 }
 0x260   : > { %v1080_v19 = vpop.f32.mrb[7].mxu1  ;;  %v1533_v21 = vpop.eup %1532  ;;  %v1209_v26 = vsel %vm1091_vm12, %v1097_v57, %v1531_v61  ;;  %1234 = vst.msk [vmem:[%s2319_s30 + $0x68] sm:$0xff] %vm1220_vm13, %v1217_v62  ;;  %v1046_v18 = vadd.f32 %v1412_v20, %v2305_v2 }
 0x261   : > { %v1040_v27 = vpop.f32.mrb[7].mxu0  ;;  %v1081_v33 = vadd.f32 %v2305_v2, %v1080_v19  ;;  %v1535_v54 = vpop.eup %1534  ;;  %1226 = vst.msk [vmem:[%s2319_s30 + $0x28] sm:$0xff] %vm1220_vm13, %v1209_v26  ;;  %v1208_v35 = vsel %vm1091_vm12, %v1096_v24, %v1533_v21  ;;  %v1367_v31 = vmul.f32 -1.442695, %v1086_v60  ;;  %v1107_v36 = vmax.f32 %v1086_v60, 0.0 }
 0x262   : > { %v1041_v11 = vadd.f32 %v2305_v2, %v1040_v27  ;;  %1225 = vst.msk [vmem:[%s2319_s30 + $0x20] sm:$0xff] %vm1220_vm13, %v1208_v35  ;;  %v1216_v45 = vsel %vm1091_vm12, %v1104_v15, %v1535_v54  ;;  %v1359_v28 = vmul.f32 -1.442695, %v1046_v18  ;;  %v1099_v51 = vmax.f32 %v1046_v18, 0.0 }
 0x263   : > { %1233 = vst.msk [vmem:[%s2319_s30 + $0x60] sm:$0xff] %vm1220_vm13, %v1216_v45  ;;  %1536 = vpow2.f32 %v1367_v31  ;;  %v1366_v17 = vmul.f32 -1.442695, %v1081_v33  ;;  %v1106_v3 = vmax.f32 %v1081_v33, 0.0 }
 0x264   : > { %v1358_v48 = vmul.f32 -1.442695, %v1041_v11  ;;  %1538 = vpow2.f32 %v1359_v28  ;;  %v1098_v49 = vmax.f32 %v1041_v11, 0.0 }
 0x266   : > { %1540 = vpow2.f32 %v1358_v48 }
 0x267   : > { %1542 = vpow2.f32 %v1366_v17 }
 0x26d   : > { %v1537_v12 = vpop.eup %1536 }
 0x26e   : > { %v1539_v29 = vpop.eup %1538  ;;  %v1171_v46 = vadd.f32 1.0, %v1537_v12 }
 0x26f   : > { %v1163_v32 = vadd.f32 1.0, %v1539_v29 }
 0x270   : > { %v1541_v43 = vpop.eup %1540  ;;  %1544 = vrcp.f32 %v1171_v46 }
 0x271   : > { %v1543_v2 = vpop.eup %1542  ;;  %v1162_v44 = vadd.f32 1.0, %v1541_v43  ;;  %1546 = vrcp.f32 %v1163_v32 }
 0x272   : > { %v1170_v0 = vadd.f32 1.0, %v1543_v2 }
 0x273   : > { %1548 = vrcp.f32 %v1162_v44 }
 0x274   : > { %1550 = vrcp.f32 %v1170_v0 }
 0x27a   : > { %v1545_v47 = vpop.eup %1544 }
 0x27b   : > { %v1547_v56 = vpop.eup %1546  ;;  %v1219_v42 = vsel %vm1091_vm12, %v1107_v36, %v1545_v47 }
 0x27c   : > { %v1211_v1 = vsel %vm1091_vm12, %v1099_v51, %v1547_v56  ;;  %1236 = vst.msk [vmem:[%s2319_s30 + $0x78] sm:$0xff] %vm1220_vm13, %v1219_v42 }
 0x27d   : > { %v1549_v63 = vpop.eup %1548  ;;  %1228 = vst.msk [vmem:[%s2319_s30 + $0x38] sm:$0xff] %vm1220_vm13, %v1211_v1 }
 0x27e   : > { %v1551_v10 = vpop.eup %1550  ;;  %v1210_v4 = vsel %vm1091_vm12, %v1098_v49, %v1549_v63 }
 0x27f   : > { %1227 = vst.msk [vmem:[%s2319_s30 + $0x30] sm:$0xff] %vm1220_vm13, %v1210_v4  ;;  %v1218_v8 = vsel %vm1091_vm12, %v1106_v3, %v1551_v10 }
 0x280   : > { %1235 = vst.msk [vmem:[%s2319_s30 + $0x70] sm:$0xff] %vm1220_vm13, %v1218_v8 }
 0x281 PF: > { %s13_s16 = sadd.s32 1, %s1590_s16   ;;  %s2443_s12 = smov %s1582_s14 }
 0x282   : > { %p10_p7 = scmp.ge.s32.totalorder %s13_s16, 6   ;;  %s2444_s13 = smov %s1586_s15 }
 0x283   : > { %s2445_s14 = smov %s2448_s17  ;;  %s2446_s15 = smov %s2452_s18 }
 0x284   :  { %12 = sbr.rel (!%p10_p7) target bundleno = 3 (0x3), region = 63 }

</bundles_post_ra>
